<compile_context>
chip_gen: v6e
topology: v6e:2x2x1
jax: 0.10.0
libtpu: 0.0.40
codegen_flags: <defaults>
</compile_context>

<pallas_src>
import functools

import jax
import jax.numpy as jnp
from jax import lax
from jax.experimental import pallas as pl
from jax.experimental.pallas import tpu as pltpu


def _round_up(x, m):
    return ((x + m - 1) // m) * m


def _smooth_top1_svm_kernel(s_ref, y_ref, out_ref, acc_ref, *,
                            alpha, inv_tau, inv_n, n_valid, n_padded, block_rows):
    i = pl.program_id(0)

    @pl.when(i == 0)
    def _init():
        acc_ref[0, 0] = jnp.float32(0.0)

    s = s_ref[...].astype(jnp.float32)          # (TM, C) score row block
    y = y_ref[...]                              # (TM, 1) int32 labels
    tm, c = s.shape

    # Gather the correct score s[r, y[r]]: one lane-index compare + row reduce.
    col_ids = lax.broadcasted_iota(jnp.int32, (tm, c), 1)
    one_hot = col_ids == y                                             # (TM, C)
    cs = jnp.sum(jnp.where(one_hot, s, jnp.float32(0.0)),
                 axis=1, keepdims=True)                                # (TM, 1)

    # z = (alpha * (s != cs) + s - cs) / tau, with /tau folded into a constant
    # multiply.  Value comparison (not index) exactly as in the PyTorch module.
    margin = jnp.where(s != cs, jnp.float32(alpha), jnp.float32(0.0))
    z = (margin + s - cs) * jnp.float32(inv_tau)                       # (TM, C)

    # Max-stabilized row logsumexp == log(sum(exp(z), axis=1)) of the reference.
    m = jnp.max(z, axis=1, keepdims=True)
    lse = jnp.log(jnp.sum(jnp.exp(z - m), axis=1, keepdims=True)) + m  # (TM, 1)

    # Partial sum of this row block; mask padded rows only if padding exists
    # (n_valid / n_padded are trace-time constants, so this branch is free).
    if n_valid < n_padded:
        row_ids = i * block_rows + lax.broadcasted_iota(jnp.int32, (tm, 1), 0)
        valid = (row_ids < n_valid).astype(jnp.float32)
        partial = jnp.sum(lse * valid)
    else:
        partial = jnp.sum(lse)
    acc_ref[0, 0] += partial

    @pl.when(i == pl.num_programs(0) - 1)
    def _finalize():
        # Mean over the *true* batch size via a constant multiply (no divide).
        out_ref[0, 0] = acc_ref[0, 0] * jnp.float32(inv_n)


def smooth_top1_svm_loss(s, y, alpha=1.0, tau=1.0, block_rows=128):
    """s: [N, C] float scores, y: [N] integer labels. Returns scalar f32 loss."""
    n, c = s.shape
    block_rows = _round_up(int(block_rows), 8)       # f32 sublane alignment
    tm = min(block_rows, _round_up(n, 8))
    n_pad = _round_up(n, tm)

    # Pad the batch to a whole number of row blocks; padded rows are masked out
    # inside the kernel and the mean divides by the true N.
    s_p = jnp.pad(s.astype(jnp.float32), ((0, n_pad - n), (0, 0)))
    y_p = jnp.pad(y.astype(jnp.int32), ((0, n_pad - n),)).reshape(n_pad, 1)

    kernel = functools.partial(
        _smooth_top1_svm_kernel,
        alpha=float(alpha),
        inv_tau=float(1.0 / tau),
        inv_n=float(1.0 / n),
        n_valid=int(n),
        n_padded=int(n_pad),
        block_rows=int(tm),
    )

    out = pl.pallas_call(
        kernel,
        out_shape=jax.ShapeDtypeStruct((1, 1), jnp.float32),
        grid_spec=pltpu.PrefetchScalarGridSpec(
            num_scalar_prefetch=0,
            grid=(n_pad // tm,),
            in_specs=[
                pl.BlockSpec((tm, c), lambda i: (i, 0)),   # (TM, C) score block
                pl.BlockSpec((tm, 1), lambda i: (i, 0)),   # (TM, 1) label block
            ],
            out_specs=pl.BlockSpec(memory_space=pltpu.MemorySpace.SMEM),
            scratch_shapes=[pltpu.SMEM((1, 1), jnp.float32)],
        ),
        compiler_params=pltpu.CompilerParams(
            # The single row-block axis carries the scalar accumulator.
            dimension_semantics=("arbitrary",),
        ),
    )(s_p, y_p)
    return out[0, 0]


def _reference_loss(s, y, alpha=1.0, tau=1.0):
    # Direct JAX transcription of the PyTorch forward.
    cs = jnp.take_along_axis(s, y[:, None].astype(jnp.int32), axis=1)   # (N, 1)
    l1 = jnp.exp((alpha * (s != cs).astype(s.dtype) + s - cs) / tau)
    return jnp.mean(jnp.log(jnp.sum(l1, axis=1)))


if __name__ == "__main__":
    key = jax.random.PRNGKey(0)
    k_s, k_y = jax.random.split(key)

    N, C = 50, 32                                   # batch of 50 score rows, 32 classes
    s = 2.0 * jax.random.normal(k_s, (N, C), dtype=jnp.float32)
    y = jax.random.randint(k_y, (N,), 0, C, dtype=jnp.int32)

    # Default tile (single row block, padded 50 -> 56) and a small tile
    # (grid of 4 row blocks, exercising the accumulator + padding mask).
    for alpha, tau, br in [(1.0, 1.0, 128), (1.0, 0.7, 16)]:
        loss = jax.block_until_ready(
            smooth_top1_svm_loss(s, y, alpha=alpha, tau=tau, block_rows=br))
        ref = jax.block_until_ready(_reference_loss(s, y, alpha=alpha, tau=tau))
        assert jnp.allclose(loss, ref, rtol=1e-5, atol=1e-5), (alpha, tau, br, loss, ref)

    print("KERNEL_OK")
</pallas_src>

<mosaic_0001>
module attributes {stable_mosaic.version = 11 : i64} {
  func.func @_smooth_top1_svm_kernel(%arg0: i32, %arg1: memref<56x32xf32, #tpu.memory_space<vmem>>, %arg2: memref<56x1xi32, #tpu.memory_space<vmem>>, %arg3: memref<1x1xf32, #tpu.memory_space<smem>>, %arg4: memref<1x1xf32, #tpu.memory_space<smem>>) attributes {dimension_semantics = [#tpu.dimension_semantics<arbitrary>], iteration_bounds = array<i64: 1>, scalar_prefetch = 0 : i64, scratch_operands = 1 : i64, tpu.core_type = #tpu.core_type<tc>, window_params = [{transform_indices = @transform_0, window_bounds = array<i64: 56, 32>}, {transform_indices = @transform_1, window_bounds = array<i64: 56, 1>}, {transform_indices = @transform_2, window_bounds = array<i64: 1, 1>}]} {
    %c0_i32 = arith.constant 0 : i32
    %0 = arith.cmpi eq, %arg0, %c0_i32 : i32
    %1 = arith.extui %0 : i1 to i32
    %c0_i32_0 = arith.constant 0 : i32
    %2 = arith.cmpi ne, %1, %c0_i32_0 : i32
    scf.if %2 {
      %cst_17 = arith.constant 0.000000e+00 : f32
      %c0_18 = arith.constant 0 : index
      %c0_19 = arith.constant 0 : index
      %50 = memref.load %arg4[%c0_18, %c0_19] : memref<1x1xf32, #tpu.memory_space<smem>>
      memref.store %cst_17, %arg4[%c0_18, %c0_19] : memref<1x1xf32, #tpu.memory_space<smem>>
    } else {
    }
    %c0 = arith.constant 0 : index
    %c0_1 = arith.constant 0 : index
    %3 = vector.load %arg1[%c0, %c0_1] : memref<56x32xf32, #tpu.memory_space<vmem>>, vector<56x32xf32>
    %c0_2 = arith.constant 0 : index
    %c0_3 = arith.constant 0 : index
    %4 = vector.load %arg2[%c0_2, %c0_3] : memref<56x1xi32, #tpu.memory_space<vmem>>, vector<56x1xi32>
    %5 = tpu.iota {dimensions = array<i32: 1>} : vector<56x32xi32>
    %6 = vector.broadcast %4 : vector<56x1xi32> to vector<56x32xi32>
    %7 = arith.cmpi eq, %5, %6 : vector<56x32xi32>
    %cst = arith.constant 0.000000e+00 : f32
    %8 = vector.broadcast %cst : f32 to vector<56x32xf32>
    %9 = arith.select %7, %3, %8 : vector<56x32xi1>, vector<56x32xf32>
    %cst_4 = arith.constant dense<0.000000e+00> : vector<56xf32>
    %10 = vector.multi_reduction <add>, %9, %cst_4 [1] : vector<56x32xf32> to vector<56xf32>
    %11 = vector.shape_cast %10 : vector<56xf32> to vector<56x1xf32>
    %12 = vector.broadcast %11 : vector<56x1xf32> to vector<56x32xf32>
    %13 = arith.cmpf one, %3, %12 : vector<56x32xf32>
    %cst_5 = arith.constant 1.000000e+00 : f32
    %cst_6 = arith.constant 0.000000e+00 : f32
    %14 = vector.broadcast %cst_5 : f32 to vector<56x32xf32>
    %15 = vector.broadcast %cst_6 : f32 to vector<56x32xf32>
    %16 = arith.select %13, %14, %15 : vector<56x32xi1>, vector<56x32xf32>
    %17 = arith.addf %16, %3 : vector<56x32xf32>
    %18 = vector.broadcast %11 : vector<56x1xf32> to vector<56x32xf32>
    %19 = arith.subf %17, %18 : vector<56x32xf32>
    %cst_7 = arith.constant 1.000000e+00 : f32
    %20 = vector.broadcast %cst_7 : f32 to vector<56x32xf32>
    %21 = arith.mulf %19, %20 : vector<56x32xf32>
    %cst_8 = arith.constant dense<0xFF800000> : vector<56xf32>
    %22 = vector.multi_reduction <maximumf>, %21, %cst_8 [1] : vector<56x32xf32> to vector<56xf32>
    %23 = vector.shape_cast %22 : vector<56xf32> to vector<56x1xf32>
    %24 = vector.broadcast %23 : vector<56x1xf32> to vector<56x32xf32>
    %25 = arith.subf %21, %24 : vector<56x32xf32>
    %26 = math.exp %25 : vector<56x32xf32>
    %cst_9 = arith.constant dense<0.000000e+00> : vector<56xf32>
    %27 = vector.multi_reduction <add>, %26, %cst_9 [1] : vector<56x32xf32> to vector<56xf32>
    %28 = vector.shape_cast %27 : vector<56xf32> to vector<56x1xf32>
    %29 = math.log %28 : vector<56x1xf32>
    %30 = arith.addf %29, %23 : vector<56x1xf32>
    %c56_i32 = arith.constant 56 : i32
    %31 = arith.muli %arg0, %c56_i32 : i32
    %32 = tpu.iota {dimensions = array<i32: 0>} : vector<56x1xi32>
    %33 = vector.broadcast %31 : i32 to vector<56x1xi32>
    %34 = arith.addi %33, %32 : vector<56x1xi32>
    %c50_i32 = arith.constant 50 : i32
    %35 = vector.broadcast %c50_i32 : i32 to vector<56x1xi32>
    %36 = arith.cmpi slt, %34, %35 : vector<56x1xi32>
    %37 = arith.extui %36 : vector<56x1xi1> to vector<56x1xi32>
    %38 = arith.sitofp %37 : vector<56x1xi32> to vector<56x1xf32>
    %39 = arith.mulf %30, %38 : vector<56x1xf32>
    %40 = vector.shape_cast %39 : vector<56x1xf32> to vector<1x56x1xf32>
    %cst_10 = arith.constant dense<0.000000e+00> : vector<1xf32>
    %41 = vector.multi_reduction <add>, %40, %cst_10 [1, 2] : vector<1x56x1xf32> to vector<1xf32>
    %42 = vector.shape_cast %41 : vector<1xf32> to vector<1x1x1xf32>
    %43 = vector.extract %42[0, 0, 0] : f32 from vector<1x1x1xf32>
    %c0_11 = arith.constant 0 : index
    %c0_12 = arith.constant 0 : index
    %44 = memref.load %arg4[%c0_11, %c0_12] : memref<1x1xf32, #tpu.memory_space<smem>>
    %45 = arith.addf %44, %43 : f32
    %c0_13 = arith.constant 0 : index
    %c0_14 = arith.constant 0 : index
    %46 = memref.load %arg4[%c0_13, %c0_14] : memref<1x1xf32, #tpu.memory_space<smem>>
    memref.store %45, %arg4[%c0_13, %c0_14] : memref<1x1xf32, #tpu.memory_space<smem>>
    %c0_i32_15 = arith.constant 0 : i32
    %47 = arith.cmpi eq, %arg0, %c0_i32_15 : i32
    %48 = arith.extui %47 : i1 to i32
    %c0_i32_16 = arith.constant 0 : i32
    %49 = arith.cmpi ne, %48, %c0_i32_16 : i32
    scf.if %49 {
      %c0_17 = arith.constant 0 : index
      %c0_18 = arith.constant 0 : index
      %50 = memref.load %arg4[%c0_17, %c0_18] : memref<1x1xf32, #tpu.memory_space<smem>>
      %cst_19 = arith.constant 2.000000e-02 : f32
      %51 = arith.mulf %50, %cst_19 : f32
      %c0_20 = arith.constant 0 : index
      %c0_21 = arith.constant 0 : index
      %52 = memref.load %arg3[%c0_20, %c0_21] : memref<1x1xf32, #tpu.memory_space<smem>>
      memref.store %51, %arg3[%c0_20, %c0_21] : memref<1x1xf32, #tpu.memory_space<smem>>
    } else {
    }
    return
  }
  func.func @transform_0(%arg0: i32) -> (i32, i32) {
    %c0_i32 = arith.constant 0 : i32
    %c0_i32_0 = arith.constant 0 : i32
    return %arg0, %c0_i32 : i32, i32
  }
  func.func @transform_1(%arg0: i32) -> (i32, i32) {
    %c0_i32 = arith.constant 0 : i32
    %c0_i32_0 = arith.constant 0 : i32
    return %arg0, %c0_i32 : i32, i32
  }
  func.func @transform_2(%arg0: i32) -> (i32, i32) {
    %c0_i32 = arith.constant 0 : i32
    %c0_i32_0 = arith.constant 0 : i32
    %c0_i32_1 = arith.constant 0 : i32
    return %c0_i32, %c0_i32_0 : i32, i32
  }
}

</mosaic_0001>

<bundles_post_ra>
// kernel: tpu_custom_call.1
= control target key start
LH: loop header
LB: loop body
LE: loop exit
PB: predicated region body
PF: predicated region fallthrough
CT: control target
= control target key end

     0   :  { %v341_v2 = vmov 0   ;;  %s470_s0 = inlined_call_operand.vmem [shape: f32[56,32], index: 0, kind: input, shape index: {}]   ;;  %s471_s1 = inlined_call_operand.vmem [shape: s32[56,1], index: 1, kind: input, shape index: {}]   ;;  %s472_s2 = inlined_call_operand.hbm [shape: f32[1,1], index: 2, kind: output, shape index: {}]  }
   0x1   :  { %v27_v0 = vld [vmem:[%s471_s1 + $0x10] sm:$0xff]  ;;  %v25_v1 = vld [vmem:[%s471_s1] sm:$0xff]  ;;  %302 = vset.pattern.permute.xlu1 %v341_v2  ;;  %301 = vset.pattern.permute.xlu0 %v341_v2  ;;  %v28_v3 = vld [vmem:[%s471_s1 + $0x18] sm:$0xff] }
   0x2   :  { %41 = vperm.xlu1 %302, %v27_v0   ;;  %35 = vperm.xlu0 %301, %v25_v1   ;;  %v26_v4 = vld [vmem:[%s471_s1 + $0x8] sm:$0xff] }
   0x3   :  { %7 = vsyncpa [#allocation4], 0  ;;  %v30_v5 = vld [vmem:[%s471_s1 + $0x28] sm:$0xff]  ;;  %v29_v6 = vld [vmem:[%s471_s1 + $0x20] sm:$0xff]  ;;  %v32_v8 = vlaneseq  ;;  %vm69_vm0 = vcmask 261120   ;;  %v342_v39 = vmov 0.0  }
   0x4   :  { %v31_v7 = vld [vmem:[%s471_s1 + $0x30] sm:$0xff]  ;;  %v18_v10 = vld [vmem:[%s470_s0] sm:$0xff]  ;;  %v19_v15 = vld [vmem:[%s470_s0 + $0x8] sm:$0xff]  ;;  %vm248_vm15 = vcmask 7168   ;;  %s343_s9 = smov [#allocation3]  }
   0x5   :  { %v33_v9 = vand.u32 127, %v32_v8  ;;  %v21_v16 = vld [vmem:[%s470_s0 + $0x18] sm:$0xff]  ;;  %v20_v17 = vld [vmem:[%s470_s0 + $0x10] sm:$0xff]  ;;  %v23_v25 = vld [vmem:[%s470_s0 + $0x28] sm:$0xff] }
   0x6   :  { %44 = vperm.xlu1 %302, %v28_v3   ;;  %38 = vperm.xlu0 %301, %v26_v4   ;;  %v22_v29 = vld [vmem:[%s470_s0 + $0x20] sm:$0xff]  ;;  %v24_v34 = vld [vmem:[%s470_s0 + $0x30] sm:$0xff] }
   0xa   :  { %50 = vperm.xlu1 %302, %v30_v5   ;;  %47 = vperm.xlu0 %301, %v29_v6  }
   0xe   :  { %53 = vperm.xlu0 %301, %v31_v7  }
  0x7d   :  { %v42_v11 = vpop.permute.xlu1 %41  ;;  %v36_v12 = vpop.permute.xlu0 %35 }
  0x7e   :  { %vm55_vm1 = vcmp.eq.s32.totalorder %v33_v9, %v36_v12  ;;  %vm57_vm2 = vcmp.eq.s32.totalorder %v33_v9, %v42_v11 }
  0x7f   :  { %v62_v13 = vsel %vm55_vm1, %v18_v10, 0.0  ;;  %v64_v22 = vsel %vm57_vm2, %v20_v17, 0.0 }
  0x80   :  { %v70_v14 = vsel %vm69_vm0, %v62_v13, 0.0  ;;  %v76_v28 = vsel %vm69_vm0, %v64_v22, 0.0 }
  0x81   :  { %v45_v18 = vpop.permute.xlu1 %44  ;;  %v39_v19 = vpop.permute.xlu0 %38  ;;  %71 = vadd.xlane.f32.xlu1 %v70_v14 }
  0x82   :  { %vm58_vm3 = vcmp.eq.s32.totalorder %v33_v9, %v45_v18  ;;  %vm56_vm4 = vcmp.eq.s32.totalorder %v33_v9, %v39_v19 }
  0x83   :  { %v63_v20 = vsel %vm56_vm4, %v19_v15, 0.0  ;;  %v65_v21 = vsel %vm58_vm3, %v21_v16, 0.0 }
  0x84   :  { %v73_v23 = vsel %vm69_vm0, %v63_v20, 0.0  ;;  %v79_v24 = vsel %vm69_vm0, %v65_v21, 0.0 }
  0x85   :  { %v51_v26 = vpop.permute.xlu1 %50  ;;  %v48_v27 = vpop.permute.xlu0 %47  ;;  %74 = vadd.xlane.f32.xlu0 %v73_v23  ;;  %80 = vadd.xlane.f32.xlu1 %v79_v24 }
  0x86   :  { %vm60_vm5 = vcmp.eq.s32.totalorder %v33_v9, %v51_v26  ;;  %vm59_vm6 = vcmp.eq.s32.totalorder %v33_v9, %v48_v27 }
  0x87   :  { %v67_v30 = vsel %vm60_vm5, %v23_v25, 0.0  ;;  %v66_v33 = vsel %vm59_vm6, %v22_v29, 0.0 }
  0x88   :  { %v85_v31 = vsel %vm69_vm0, %v67_v30, 0.0  ;;  %v82_v35 = vsel %vm69_vm0, %v66_v33, 0.0 }
  0x89   :  { %v54_v32 = vpop.permute.xlu0 %53  ;;  %77 = vadd.xlane.f32.xlu0 %v76_v28  ;;  %86 = vadd.xlane.f32.xlu1 %v85_v31 }
  0x8a   :  { %vm61_vm7 = vcmp.eq.s32.totalorder %v33_v9, %v54_v32 }
  0x8b   :  { %v68_v36 = vsel %vm61_vm7, %v24_v34, 0.0 }
  0x8c   :  { %v88_v37 = vsel %vm69_vm0, %v68_v36, 0.0 }
  0x8d   :  { %83 = vadd.xlane.f32.xlu0 %v82_v35 }
  0x91   :  { %89 = vadd.xlane.f32.xlu0 %v88_v37 }
 0x10a   :  { %v72_v38 = vpop.xlane.xlu1 %71 }
 0x10b   :  { %vm91_vm8 = vcmp.ne.f32.partialorder %v18_v10, %v72_v38 }
 0x10c   :  { %v98_v40 = vsel %vm91_vm8, 1.0, %v342_v39 }
 0x10d   :  { %v105_v41 = vadd.f32 %v98_v40, %v18_v10 }
 0x10e   :  { %v75_v42 = vpop.xlane.xlu0 %74  ;;  %v81_v43 = vpop.xlane.xlu1 %80 }
 0x10f   :  { %v112_v44 = vsub.f32 %v105_v41, %v72_v38  ;;  %vm92_vm9 = vcmp.ne.f32.partialorder %v19_v15, %v75_v42  ;;  %vm94_vm10 = vcmp.ne.f32.partialorder %v21_v16, %v81_v43 }
 0x110   :  { %v99_v45 = vsel %vm92_vm9, 1.0, %v342_v39  ;;  %v101_v46 = vsel %vm94_vm10, 1.0, %v342_v39 }
 0x111   :  { %v106_v47 = vadd.f32 %v99_v45, %v19_v15  ;;  %v108_v48 = vadd.f32 %v101_v46, %v21_v16  ;;  %v119_v49 = vsel %vm69_vm0, %v112_v44, -inf }
 0x112   :  { %v78_v50 = vpop.xlane.xlu0 %77  ;;  %120 = vmax.xlane.f32.xlu1 %v119_v49  ;;  %v87_v51 = vpop.xlane.xlu1 %86 }
 0x113   :  { %v113_v52 = vsub.f32 %v106_v47, %v75_v42  ;;  %vm93_vm11 = vcmp.ne.f32.partialorder %v20_v17, %v78_v50  ;;  %vm96_vm12 = vcmp.ne.f32.partialorder %v23_v25, %v87_v51  ;;  %v115_v55 = vsub.f32 %v108_v48, %v81_v43 }
 0x114   :  { %v100_v53 = vsel %vm93_vm11, 1.0, %v342_v39  ;;  %v103_v54 = vsel %vm96_vm12, 1.0, %v342_v39 }
 0x115   :  { %v107_v56 = vadd.f32 %v100_v53, %v20_v17  ;;  %v110_v57 = vadd.f32 %v103_v54, %v23_v25  ;;  %v122_v58 = vsel %vm69_vm0, %v113_v52, -inf  ;;  %v128_v1 = vsel %vm69_vm0, %v115_v55, -inf }
 0x116   :  { %123 = vmax.xlane.f32.xlu0 %v122_v58  ;;  %v84_v59 = vpop.xlane.xlu0 %83 }
 0x117   :  { %v114_v60 = vsub.f32 %v107_v56, %v78_v50  ;;  %vm95_vm13 = vcmp.ne.f32.partialorder %v22_v29, %v84_v59  ;;  %v117_v62 = vsub.f32 %v110_v57, %v87_v51 }
 0x118   :  { %v102_v61 = vsel %vm95_vm13, 1.0, %v342_v39 }
 0x119   :  { %v109_v63 = vadd.f32 %v102_v61, %v22_v29  ;;  %v125_v0 = vsel %vm69_vm0, %v114_v60, -inf  ;;  %v134_v7 = vsel %vm69_vm0, %v117_v62, -inf  ;;  %v205_v61 = vshrl.u32 %v32_v8, 7 }
 0x11a   :  { %v90_v2 = vpop.xlane.xlu0 %89  ;;  %126 = vmax.xlane.f32.xlu1 %v125_v0  ;;  %129 = vmax.xlane.f32.xlu0 %v128_v1 }
 0x11b   :  { %v116_v3 = vsub.f32 %v109_v63, %v84_v59  ;;  %vm97_vm14 = vcmp.ne.f32.partialorder %v24_v34, %v90_v2 }
 0x11c   :  { %v104_v4 = vsel %vm97_vm14, 1.0, %v342_v39 }
 0x11d   :  { %v111_v5 = vadd.f32 %v104_v4, %v24_v34  ;;  %v131_v6 = vsel %vm69_vm0, %v116_v3, -inf }
 0x11e   :  { %132 = vmax.xlane.f32.xlu1 %v131_v6  ;;  %135 = vmax.xlane.f32.xlu0 %v134_v7  ;;  %v211_v6 = vadd.s32 48, %v205_v61 }
 0x11f   :  { %v118_v9 = vsub.f32 %v111_v5, %v90_v2 }
 0x121   :  { %v137_v10 = vsel %vm69_vm0, %v118_v9, -inf }
 0x122   :  { %138 = vmax.xlane.f32.xlu1 %v137_v10 }
 0x19b   :  { %v423_v11 = vpop.xlane.xlu1 %120 }
 0x19c   :  { %v140_v12 = vsub.f32 %v112_v44, %v423_v11 }
 0x19e   :  { %v147_v13 = vmul.f32 1.442695, %v140_v12 }
 0x19f   :  { %v426_v14 = vpop.xlane.xlu0 %123 }
 0x1a0   :  { %303 = vpow2.f32 %v147_v13  ;;  %v141_v15 = vsub.f32 %v113_v52, %v426_v14 }
 0x1a2   :  { %v149_v16 = vmul.f32 1.442695, %v141_v15 }
 0x1a3   :  { %v429_v17 = vpop.xlane.xlu0 %129  ;;  %v431_v18 = vpop.xlane.xlu1 %126 }
 0x1a4   :  { %305 = vpow2.f32 %v149_v16  ;;  %v143_v19 = vsub.f32 %v115_v55, %v429_v17  ;;  %v142_v20 = vsub.f32 %v114_v60, %v431_v18 }
 0x1a6   :  { %v153_v21 = vmul.f32 1.442695, %v143_v19  ;;  %v151_v22 = vmul.f32 1.442695, %v142_v20 }
 0x1a7   :  { %v435_v23 = vpop.xlane.xlu0 %135  ;;  %v437_v24 = vpop.xlane.xlu1 %132 }
 0x1a8   :  { %307 = vpow2.f32 %v153_v21  ;;  %v145_v25 = vsub.f32 %v117_v62, %v435_v23  ;;  %v144_v26 = vsub.f32 %v116_v3, %v437_v24 }
 0x1a9   :  { %309 = vpow2.f32 %v151_v22 }
 0x1aa   :  { %v157_v27 = vmul.f32 1.442695, %v145_v25  ;;  %v155_v28 = vmul.f32 1.442695, %v144_v26 }
 0x1ab   :  { %v441_v29 = vpop.xlane.xlu1 %138 }
 0x1ac   :  { %311 = vpow2.f32 %v157_v27  ;;  %v146_v30 = vsub.f32 %v118_v9, %v441_v29 }
 0x1ad   :  { %v304_v31 = vpop.eup %303  ;;  %313 = vpow2.f32 %v155_v28 }
 0x1ae   :  { %v159_v32 = vmul.f32 1.442695, %v146_v30  ;;  %v161_v33 = vsel %vm69_vm0, %v304_v31, 0.0 }
 0x1af   :  { %162 = vadd.xlane.f32.xlu0 %v161_v33 }
 0x1b0   :  { %315 = vpow2.f32 %v159_v32 }
 0x1b1   :  { %v306_v34 = vpop.eup %305 }
 0x1b2   :  { %v164_v35 = vsel %vm69_vm0, %v306_v34, 0.0 }
 0x1b3   :  { %165 = vadd.xlane.f32.xlu1 %v164_v35 }
 0x1b5   :  { %v308_v36 = vpop.eup %307 }
 0x1b6   :  { %v310_v37 = vpop.eup %309  ;;  %v170_v38 = vsel %vm69_vm0, %v308_v36, 0.0 }
 0x1b7   :  { %171 = vadd.xlane.f32.xlu1 %v170_v38  ;;  %v167_v40 = vsel %vm69_vm0, %v310_v37, 0.0 }
 0x1b8   :  { %168 = vadd.xlane.f32.xlu0 %v167_v40 }
 0x1b9   :  { %v312_v41 = vpop.eup %311 }
 0x1ba   :  { %v314_v42 = vpop.eup %313  ;;  %v176_v43 = vsel %vm69_vm0, %v312_v41, 0.0 }
 0x1bb   :  { %177 = vadd.xlane.f32.xlu1 %v176_v43  ;;  %v173_v44 = vsel %vm69_vm0, %v314_v42, 0.0 }
 0x1bc   :  { %174 = vadd.xlane.f32.xlu0 %v173_v44 }
 0x1bd   :  { %v316_v45 = vpop.eup %315 }
 0x1be   :  { %v179_v46 = vsel %vm69_vm0, %v316_v45, 0.0  ;;  %vm226_vm0 = vcmp.lt.s32.totalorder %v211_v6, 50 }
 0x1bf   :  { %v295_v20 = vsel %vm226_vm0, 1.0, %v342_v39 }
 0x1c0   :  { %180 = vadd.xlane.f32.xlu0 %v179_v46 }
 0x238   :  { %v163_v47 = vpop.xlane.xlu0 %162 }
 0x239   :  { %317 = vlog2.f32 %v163_v47 }
 0x23c   :  { %v166_v48 = vpop.xlane.xlu1 %165 }
 0x23d   :  { %319 = vlog2.f32 %v166_v48 }
 0x240   :  { %v172_v49 = vpop.xlane.xlu1 %171 }
 0x241   :  { %v169_v50 = vpop.xlane.xlu0 %168  ;;  %321 = vlog2.f32 %v172_v49 }
 0x242   :  { %323 = vlog2.f32 %v169_v50 }
 0x244   :  { %v178_v51 = vpop.xlane.xlu1 %177 }
 0x245   :  { %v175_v52 = vpop.xlane.xlu0 %174  ;;  %325 = vlog2.f32 %v178_v51 }
 0x246   :  { %327 = vlog2.f32 %v175_v52  ;;  %v318_v53 = vpop.eup %317 }
 0x247   :  { %v183_v56 = vmul.f32 0.6931472, %v318_v53 }
 0x249   :  { %v181_v54 = vpop.xlane.xlu0 %180  ;;  %v196_v60 = vadd.f32 %v183_v56, %v423_v11 }
 0x24a   :  { %v320_v55 = vpop.eup %319  ;;  %329 = vlog2.f32 %v181_v54 }
 0x24b   :  { %v185_v57 = vmul.f32 0.6931472, %v320_v55  ;;  %v249_v3 = vsel %vm248_vm15, %v196_v60, 0.0 }
 0x24d   :  { %v197_v58 = vadd.f32 %v185_v57, %v426_v14 }
 0x24e   :  { %v322_v59 = vpop.eup %321 }
 0x24f   :  { %v324_v62 = vpop.eup %323  ;;  %v189_v63 = vmul.f32 0.6931472, %v322_v59  ;;  %v250_v0 = vsel %vm248_vm15, %v197_v58, 0.0 }
 0x250   :  { %v187_v1 = vmul.f32 0.6931472, %v324_v62  ;;  %v251_v9 = vadd.f32 %v250_v0, %v249_v3 }
 0x251   :  { %v199_v5 = vadd.f32 %v189_v63, %v429_v17 }
 0x252   :  { %v326_v2 = vpop.eup %325  ;;  %v198_v4 = vadd.f32 %v187_v1, %v431_v18 }
 0x253   :  { %v328_v7 = vpop.eup %327  ;;  %v193_v8 = vmul.f32 0.6931472, %v326_v2  ;;  %v254_v13 = vsel %vm248_vm15, %v199_v5, 0.0 }
 0x254   :  { %v252_v10 = vsel %vm248_vm15, %v198_v4, 0.0  ;;  %v191_v11 = vmul.f32 0.6931472, %v328_v7 }
 0x255   :  { %v253_v12 = vadd.f32 %v252_v10, %v251_v9  ;;  %v201_v19 = vadd.f32 %v193_v8, %v435_v23 }
 0x256   :  { %v200_v14 = vadd.f32 %v191_v11, %v437_v24 }
 0x257   :  { %v330_v15 = vpop.eup %329  ;;  %v255_v16 = vadd.f32 %v254_v13, %v253_v12  ;;  %v258_v26 = vsel %vm248_vm15, %v201_v19, 0.0 }
 0x258   :  { %v195_v18 = vmul.f32 0.6931472, %v330_v15  ;;  %v256_v17 = vsel %vm248_vm15, %v200_v14, 0.0 }
 0x259   :  { %v257_v21 = vadd.f32 %v256_v17, %v255_v16 }
 0x25a   :  { %v202_v22 = vadd.f32 %v195_v18, %v441_v29 }
 0x25b   :  { %v259_v27 = vadd.f32 %v258_v26, %v257_v21 }
 0x25c   :  { %v247_v25 = vmul.f32 %v295_v20, %v202_v22 }
 0x25e   :  { %v260_v28 = vsel %vm248_vm15, %v247_v25, 0.0 }
 0x25f   :  { %v261_v24 = vadd.f32 %v260_v28, %v259_v27 }
 0x261   :  { %262 = vadd.xlane.f32.xlu1 %v261_v24 }
 0x2ea   :  { %v263_v30 = vpop.xlane.xlu1 %262 }
 0x2eb   :  { %v264_v31 = vrot.slane %v263_v30, 4 }
 0x2ed   :  { %v265_v32 = vadd.f32 %v264_v31, %v263_v30 }
 0x2ef   :  { %v266_v23 = vrot.slane %v265_v32, 2 }
 0x2f1   :  { %v267_v33 = vadd.f32 %v266_v23, %v265_v32 }
 0x2f3   :  { %v268_v34 = vrot.slane %v267_v33, 1 }
 0x2f5   :  { %v269_v35 = vadd.f32 %v268_v34, %v267_v33 }
 0x2f7   :  { %296 = vpush %v269_v35 }
 0x328   :  { %s297_s0 = spop %296 }
 0x329   :  { %s279_s8 = smul.f32 0.02, %s297_s0 }
 0x32b   :  { %281 = sst [smem:[#allocation3]] %s279_s8 }
 0x32c   :  { %289 = dma.smem_to_hbm %s343_s9, 16, %s472_s2, [#allocation4]  }
 0x32d   :  { %339 = dma.done.wait [#allocation4], 16  }
 0x32e   :  { %340 = vsyncadd [#allocation4], 4294967280 }
 0x32f   :  { %293 = sfence }
 0x330   :  { %294 = vsyncpa [#allocation4], 1 }

</bundles_post_ra>
